<compile_context>
chip_gen: v7x
topology: tpu7x:2x2x1
jax: 0.10.0
libtpu: 0.0.40
codegen_flags: <defaults>
</compile_context>

<pallas_src>
import functools

import numpy as np
import jax
import jax.numpy as jnp
from jax import lax
from jax.experimental import pallas as pl
from jax.experimental.pallas import tpu as pltpu

SCALE = 10.0
BN_EPS = 1e-5
NORM_EPS_SQ = 1e-24   # eps on the sum-of-squares (== eps of 1e-12 on the norm)


def _round_up(n, m):
    return ((n + m - 1) // m) * m


def _cdiv(a, b):
    return -(-a // b)


def _vmem_limit_bytes():
    # Per-generation scoped-VMEM budget with headroom: ~96 MiB on v5e/v6e,
    # ~48 MiB on v7x.  Falls back to a conservative 48 MiB.
    try:
        cap = int(pltpu.get_tpu_info().vmem_capacity_bytes)
        return (cap * 3) // 4
    except Exception:
        return 48 * 1024 * 1024


# ---------------------------------------------------------------------------
# Kernel 1 (one-shot, grid=()): unit-norm class prototypes, already transposed.
#   attrs_t : [A, C_pad]   w1 : [hid, A]   b1 : [hid, 1]
#   w2      : [feat, hid]  b2 : [feat, 1]  ->  pn_T : [feat, C_pad]
# All math in f32; output cast to matmul_dtype only at the store.
# TODO(synk): for very large num_classes / hid_dim this grid=() kernel should
# be tiled over the class axis (two-pass BN stats) to fit v7x's 64 MiB VMEM.
# ---------------------------------------------------------------------------
def protos_kernel(num_classes, attrs_t_ref, w1_ref, b1_ref, w2_ref, b2_ref, pnt_ref):
    # Linear(attr_dim -> hid_dim) + ReLU, transposed: [hid, C_pad].
    h = jnp.dot(w1_ref[...], attrs_t_ref[...], preferred_element_type=jnp.float32)
    h = jnp.maximum(h + b1_ref[...], 0.0)

    # BatchNorm1d(hid, affine=False): training-mode batch stats over the class
    # axis (lane axis here).  Padded class columns are masked out of the stats.
    c_pad = h.shape[1]
    col = lax.broadcasted_iota(jnp.int32, (1, c_pad), 1)
    valid = col < num_classes                                  # [1, C_pad]
    inv_n = 1.0 / num_classes
    m = jnp.sum(jnp.where(valid, h, 0.0), axis=1, keepdims=True) * inv_n
    d = jnp.where(valid, h - m, 0.0)
    var = jnp.sum(d * d, axis=1, keepdims=True) * inv_n        # biased, two-pass
    h = (h - m) * lax.rsqrt(var + BN_EPS)

    # Linear(hid_dim -> feat_dim) + ReLU, transposed: [feat, C_pad].
    p = jnp.dot(w2_ref[...], h, preferred_element_type=jnp.float32)
    p = jnp.maximum(p + b2_ref[...], 0.0)

    # Per-class (per-column) L2 normalization; SCALE^2 is folded into kernel 2.
    ss = jnp.sum(p * p, axis=0, keepdims=True)                 # [1, C_pad]
    inv = lax.rsqrt(jnp.maximum(ss, NORM_EPS_SQ))
    pnt_ref[...] = jnp.where(valid, p * inv, 0.0).astype(pnt_ref.dtype)


# ---------------------------------------------------------------------------
# Kernel 2: logits tile = (SCALE^2 * normalize(x_tile)) @ pn_T tile
#   x    : [TB, feat] (f32)     pn_T : [feat, TC]     out : [TB, TC] (f32)
# Canonical [M,K]x[K,N] MXU matmul; SCALE^2 folded into the [TB,1] row factor.
# ---------------------------------------------------------------------------
def logits_kernel(x_ref, pnt_ref, out_ref):
    x = x_ref[...]
    inv = (SCALE * SCALE) * lax.rsqrt(
        jnp.maximum(jnp.sum(x * x, axis=1, keepdims=True), NORM_EPS_SQ))
    xn = (x * inv).astype(pnt_ref.dtype)
    out_ref[...] = jnp.dot(
        xn, pnt_ref[...], preferred_element_type=jnp.float32).astype(out_ref.dtype)


# ---------------------------------------------------------------------------
# Wrapper
# ---------------------------------------------------------------------------
def attrs_head_forward(x, attrs, w1, b1, w2, b2, *,
                       matmul_dtype=jnp.bfloat16, block_b=512, block_c=512):
    """x: [B, feat], attrs: [C, A], w1: [hid, A], b1: [hid], w2: [feat, hid], b2: [feat]."""
    x = jnp.asarray(x, jnp.float32)
    B, feat = x.shape
    C, A = attrs.shape
    hid = w1.shape[0]
    vmem_limit = _vmem_limit_bytes()

    # ---- class-axis tiling: lane-dense (multiple-of-128) class tiles ----
    nc = max(1, _cdiv(C, block_c))
    TC = _round_up(_cdiv(C, nc), 128)
    C_pad = nc * TC

    # ---- batch-axis tiling; ensure >=2 parallel tiles when feasible (v7x) ----
    nb = max(1, _cdiv(B, block_b))
    if nb * nc == 1 and B >= 16:
        nb = 2
    TB = _round_up(_cdiv(B, nb), 8)
    B_pad = nb * TB

    # Glue: transposed + zero-padded attrs (tiny), untransposed weights,
    # column-vector biases.  Kernel 1 stays in f32 for parity with the module.
    attrs_t = jnp.pad(jnp.asarray(attrs, jnp.float32),
                      ((0, C_pad - C), (0, 0))).T               # [A, C_pad]
    w1_f = jnp.asarray(w1, jnp.float32)                         # [hid, A]
    w2_f = jnp.asarray(w2, jnp.float32)                         # [feat, hid]
    b1_col = jnp.asarray(b1, jnp.float32).reshape(hid, 1)
    b2_col = jnp.asarray(b2, jnp.float32).reshape(feat, 1)

    full = lambda shape: pl.BlockSpec(shape, lambda: (0,) * len(shape))

    # ---- kernel 1: class prototypes (depends only on attrs + weights) ----
    pn_t = pl.pallas_call(
        functools.partial(protos_kernel, C),
        out_shape=jax.ShapeDtypeStruct((feat, C_pad), matmul_dtype),
        grid=(),
        in_specs=[full((A, C_pad)), full((hid, A)), full((hid, 1)),
                  full((feat, hid)), full((feat, 1))],
        out_specs=full((feat, C_pad)),
        compiler_params=pltpu.CompilerParams(vmem_limit_bytes=vmem_limit),
    )(attrs_t, w1_f, b1_col, w2_f, b2_col)

    if B_pad != B:
        x = jnp.pad(x, ((0, B_pad - B), (0, 0)))

    # ---- kernel 2: scaled-cosine logits, tiled over (batch, class) ----
    logits = pl.pallas_call(
        logits_kernel,
        out_shape=jax.ShapeDtypeStruct((B_pad, C_pad), jnp.float32),
        grid=(nb, nc),
        in_specs=[
            pl.BlockSpec((TB, feat), lambda i, j: (i, 0)),
            pl.BlockSpec((feat, TC), lambda i, j: (0, j)),
        ],
        out_specs=pl.BlockSpec((TB, TC), lambda i, j: (i, j)),
        compiler_params=pltpu.CompilerParams(
            dimension_semantics=("parallel", "parallel"),
            vmem_limit_bytes=vmem_limit),
    )(x, pn_t)

    return logits[:B, :C]


# ---------------------------------------------------------------------------
# Pure-JAX reference (matches the PyTorch module's forward semantics)
# ---------------------------------------------------------------------------
def attrs_head_reference(x, attrs, w1, b1, w2, b2):
    h = jnp.maximum(attrs @ w1.T + b1, 0.0)
    mean = jnp.mean(h, axis=0, keepdims=True)
    var = jnp.mean((h - mean) ** 2, axis=0, keepdims=True)
    h = (h - mean) / jnp.sqrt(var + BN_EPS)
    protos = jnp.maximum(h @ w2.T + b2, 0.0)
    protos = SCALE * protos / jnp.maximum(
        jnp.linalg.norm(protos, axis=1, keepdims=True), 1e-12)
    xn = SCALE * x / jnp.maximum(jnp.linalg.norm(x, axis=1, keepdims=True), 1e-12)
    return xn @ protos.T


if __name__ == "__main__":
    # Small synthetic sizes consistent with the module's forward.
    B = 8            # batch of image features
    C = 16           # number of classes (rows of `attrs`)
    A = 32           # attribute dimension
    HID = 32         # config.hid_dim
    FEAT = 64        # config.feat_dim

    key = jax.random.PRNGKey(0)
    k_attrs, k_x, k_w1, k_b1, k_w2, k_b2 = jax.random.split(key, 6)

    attrs = jax.random.uniform(k_attrs, (C, A), jnp.float32)       # class-attribute matrix
    x = jax.random.normal(k_x, (B, FEAT), jnp.float32)             # image features

    # Linear(attr_dim -> hid_dim): default-style small init (deterministic).
    w1 = jax.random.normal(k_w1, (HID, A), jnp.float32) * (1.0 / np.sqrt(A))
    b1 = jax.random.normal(k_b1, (HID,), jnp.float32) * 0.01

    # Output Linear(hid_dim -> feat_dim): 'proper' init with ReLU, normal dist.
    var = 2.0 / (HID * FEAT * (1.0 - 1.0 / np.pi))
    w2 = jax.random.normal(k_w2, (FEAT, HID), jnp.float32) * np.sqrt(var)
    b2 = jax.random.normal(k_b2, (FEAT,), jnp.float32) * 0.01

    ref = np.asarray(attrs_head_reference(x, attrs, w1, b1, w2, b2))

    # f32 operand path: strict check against the reference.
    out_f32 = attrs_head_forward(x, attrs, w1, b1, w2, b2,
                                 matmul_dtype=jnp.float32)
    out_f32 = np.asarray(jax.block_until_ready(out_f32))
    np.testing.assert_allclose(out_f32, ref, rtol=2e-4, atol=1e-3)

    # Default path: bf16 GEMM operands, f32 accumulation (full-rate MXU).
    out_bf16 = attrs_head_forward(x, attrs, w1, b1, w2, b2)
    out_bf16 = np.asarray(jax.block_until_ready(out_bf16))
    assert np.all(np.isfinite(out_bf16))
    np.testing.assert_allclose(out_bf16, ref, rtol=5e-2, atol=1.0)

    print("KERNEL_OK")
</pallas_src>

<mosaic_0001>
module attributes {stable_mosaic.version = 11 : i64} {
  func.func @protos_kernel(%arg0: memref<32x128xf32, #tpu.memory_space<vmem>>, %arg1: memref<32x32xf32, #tpu.memory_space<vmem>>, %arg2: memref<32x1xf32, #tpu.memory_space<vmem>>, %arg3: memref<64x32xf32, #tpu.memory_space<vmem>>, %arg4: memref<64x1xf32, #tpu.memory_space<vmem>>, %arg5: memref<64x128xf32, #tpu.memory_space<vmem>>) attributes {dimension_semantics = [], scalar_prefetch = 0 : i64, scratch_operands = 0 : i64, tpu.core_type = #tpu.core_type<tc>} {
    %c0 = arith.constant 0 : index
    %c0_0 = arith.constant 0 : index
    %0 = vector.load %arg1[%c0, %c0_0] : memref<32x32xf32, #tpu.memory_space<vmem>>, vector<32x32xf32>
    %c0_1 = arith.constant 0 : index
    %c0_2 = arith.constant 0 : index
    %1 = vector.load %arg0[%c0_1, %c0_2] : memref<32x128xf32, #tpu.memory_space<vmem>>, vector<32x128xf32>
    %cst = arith.constant dense<0.000000e+00> : vector<32x128xf32>
    %2 = tpu.matmul %0, %1, %cst {dimension_numbers = #tpu.dot_dimension_numbers<[1], [0], [0], [1], [0, 0, 1, 1], [], []>} : vector<32x32xf32>, vector<32x128xf32>, vector<32x128xf32> -> vector<32x128xf32>
    %c0_3 = arith.constant 0 : index
    %c0_4 = arith.constant 0 : index
    %3 = vector.load %arg2[%c0_3, %c0_4] : memref<32x1xf32, #tpu.memory_space<vmem>>, vector<32x1xf32>
    %4 = vector.broadcast %3 : vector<32x1xf32> to vector<32x128xf32>
    %5 = arith.addf %2, %4 : vector<32x128xf32>
    %cst_5 = arith.constant 0.000000e+00 : f32
    %6 = vector.broadcast %cst_5 : f32 to vector<32x128xf32>
    %7 = arith.maximumf %5, %6 : vector<32x128xf32>
    %8 = tpu.iota {dimensions = array<i32: 1>} : vector<1x128xi32>
    %c16_i32 = arith.constant 16 : i32
    %9 = vector.broadcast %c16_i32 : i32 to vector<1x128xi32>
    %10 = arith.cmpi slt, %8, %9 : vector<1x128xi32>
    %cst_6 = arith.constant 0.000000e+00 : f32
    %11 = vector.shape_cast %10 : vector<1x128xi1> to vector<1x128xi1>
    %12 = vector.broadcast %11 : vector<1x128xi1> to vector<32x128xi1>
    %13 = vector.broadcast %cst_6 : f32 to vector<32x128xf32>
    %14 = arith.select %12, %7, %13 : vector<32x128xi1>, vector<32x128xf32>
    %cst_7 = arith.constant dense<0.000000e+00> : vector<32xf32>
    %15 = vector.multi_reduction <add>, %14, %cst_7 [1] : vector<32x128xf32> to vector<32xf32>
    %16 = vector.shape_cast %15 : vector<32xf32> to vector<32x1xf32>
    %cst_8 = arith.constant 6.250000e-02 : f32
    %17 = vector.broadcast %cst_8 : f32 to vector<32x1xf32>
    %18 = arith.mulf %16, %17 : vector<32x1xf32>
    %19 = vector.broadcast %18 : vector<32x1xf32> to vector<32x128xf32>
    %20 = arith.subf %7, %19 : vector<32x128xf32>
    %cst_9 = arith.constant 0.000000e+00 : f32
    %21 = vector.shape_cast %10 : vector<1x128xi1> to vector<1x128xi1>
    %22 = vector.broadcast %21 : vector<1x128xi1> to vector<32x128xi1>
    %23 = vector.broadcast %cst_9 : f32 to vector<32x128xf32>
    %24 = arith.select %22, %20, %23 : vector<32x128xi1>, vector<32x128xf32>
    %25 = arith.mulf %24, %24 : vector<32x128xf32>
    %cst_10 = arith.constant dense<0.000000e+00> : vector<32xf32>
    %26 = vector.multi_reduction <add>, %25, %cst_10 [1] : vector<32x128xf32> to vector<32xf32>
    %27 = vector.shape_cast %26 : vector<32xf32> to vector<32x1xf32>
    %cst_11 = arith.constant 6.250000e-02 : f32
    %28 = vector.broadcast %cst_11 : f32 to vector<32x1xf32>
    %29 = arith.mulf %27, %28 : vector<32x1xf32>
    %30 = vector.broadcast %18 : vector<32x1xf32> to vector<32x128xf32>
    %31 = arith.subf %7, %30 : vector<32x128xf32>
    %cst_12 = arith.constant 9.99999974E-6 : f32
    %32 = vector.broadcast %cst_12 : f32 to vector<32x1xf32>
    %33 = arith.addf %29, %32 : vector<32x1xf32>
    %34 = math.rsqrt %33 : vector<32x1xf32>
    %35 = vector.broadcast %34 : vector<32x1xf32> to vector<32x128xf32>
    %36 = arith.mulf %31, %35 : vector<32x128xf32>
    %c0_13 = arith.constant 0 : index
    %c0_14 = arith.constant 0 : index
    %37 = vector.load %arg3[%c0_13, %c0_14] : memref<64x32xf32, #tpu.memory_space<vmem>>, vector<64x32xf32>
    %cst_15 = arith.constant dense<0.000000e+00> : vector<64x128xf32>
    %38 = tpu.matmul %37, %36, %cst_15 {dimension_numbers = #tpu.dot_dimension_numbers<[1], [0], [0], [1], [0, 0, 1, 1], [], []>} : vector<64x32xf32>, vector<32x128xf32>, vector<64x128xf32> -> vector<64x128xf32>
    %c0_16 = arith.constant 0 : index
    %c0_17 = arith.constant 0 : index
    %39 = vector.load %arg4[%c0_16, %c0_17] : memref<64x1xf32, #tpu.memory_space<vmem>>, vector<64x1xf32>
    %40 = vector.broadcast %39 : vector<64x1xf32> to vector<64x128xf32>
    %41 = arith.addf %38, %40 : vector<64x128xf32>
    %cst_18 = arith.constant 0.000000e+00 : f32
    %42 = vector.broadcast %cst_18 : f32 to vector<64x128xf32>
    %43 = arith.maximumf %41, %42 : vector<64x128xf32>
    %44 = arith.mulf %43, %43 : vector<64x128xf32>
    %cst_19 = arith.constant dense<0.000000e+00> : vector<128xf32>
    %45 = vector.multi_reduction <add>, %44, %cst_19 [0] : vector<64x128xf32> to vector<128xf32>
    %46 = vector.shape_cast %45 : vector<128xf32> to vector<1x128xf32>
    %cst_20 = arith.constant 1.000000e-24 : f32
    %47 = vector.broadcast %cst_20 : f32 to vector<1x128xf32>
    %48 = arith.maximumf %46, %47 : vector<1x128xf32>
    %49 = math.rsqrt %48 : vector<1x128xf32>
    %50 = vector.broadcast %49 : vector<1x128xf32> to vector<64x128xf32>
    %51 = arith.mulf %43, %50 : vector<64x128xf32>
    %cst_21 = arith.constant 0.000000e+00 : f32
    %52 = vector.shape_cast %10 : vector<1x128xi1> to vector<1x128xi1>
    %53 = vector.broadcast %52 : vector<1x128xi1> to vector<64x128xi1>
    %54 = vector.broadcast %cst_21 : f32 to vector<64x128xf32>
    %55 = arith.select %53, %51, %54 : vector<64x128xi1>, vector<64x128xf32>
    %c0_22 = arith.constant 0 : index
    %c0_23 = arith.constant 0 : index
    %56 = vector.load %arg5[%c0_22, %c0_23] : memref<64x128xf32, #tpu.memory_space<vmem>>, vector<64x128xf32>
    tpu.vector_store %arg5[%c0_22, %c0_23], %55 {strides = array<i32>} : memref<64x128xf32, #tpu.memory_space<vmem>>, vector<64x128xf32>,
    return
  }
}

</mosaic_0001>

<bundles_post_ra>
// kernel: tpu_custom_call.1
= control target key start
LH: loop header
LB: loop body
LE: loop exit
PB: predicated region body
PF: predicated region fallthrough
CT: control target
= control target key end

     0   :  { %vm53_vm0 = vcmask 261120   ;;  %v594_v6 = vmov 0   ;;  %s778_s0 = inlined_call_operand.vmem [shape: f32[32,128], index: 0, kind: input, shape index: {}]   ;;  %s779_s1 = inlined_call_operand.vmem [shape: f32[32,32], index: 1, kind: input, shape index: {}]   ;;  %s780_s2 = inlined_call_operand.vmem [shape: f32[32,1], index: 2, kind: input, shape index: {}]   ;;  %s781_s3 = inlined_call_operand.vmem [shape: f32[64,32], index: 3, kind: input, shape index: {}]   ;;  %s782_s4 = inlined_call_operand.vmem [shape: f32[64,1], index: 4, kind: input, shape index: {}]   ;;  %s783_s5 = inlined_call_operand.hbm [shape: f32[64,128], index: 5, kind: output, shape index: {}]  }
   0x1   :  { %v25_v0 = vld [vmem:[%s778_s0] sm:$0xff]  ;;  %v26_v1 = vld [vmem:[%s778_s0 + $0x8] sm:$0xff]  ;;  %v27_v2 = vld [vmem:[%s778_s0 + $0x10] sm:$0xff]  ;;  %558 = vset.pattern.permute.xlu0 %v594_v6  ;;  %559 = vset.pattern.permute.xlu1 %v594_v6 }
   0x2   :  { %v534_v3 = vpack.c.bf16 %v26_v1, %v25_v0  ;;  %v28_v4 = vld [vmem:[%s778_s0 + $0x18] sm:$0xff]  ;;  %v21_v5 = vld [vmem:[%s779_s1] sm:$0xff]  ;;  %v31_v9 = vld [vmem:[%s780_s2 + $0x10] sm:$0xff] }
   0x3   :  { %v538_v7 = vpack.c.bf16 %v28_v4, %v27_v2  ;;  %508 = vmatprep.mubr.msk.f32.mxu0 %vm53_vm0, %v21_v5  ;;  %v29_v8 = vld [vmem:[%s780_s2] sm:$0xff]  ;;  %45 = vperm.xlu1 %559, %v31_v9   ;;  %v30_v10 = vld [vmem:[%s780_s2 + $0x8] sm:$0xff] }
   0x4   :  { %535 = vmatprep.subr.bf16.mxu0 %v534_v3  ;;  %35 = vperm.xlu0 %558, %v29_v8  }
   0x5   :  { %537 = vmatpush3.bf16.msra.mxu0 %v534_v3 }
   0x6   :  { %10 = vsyncpa [#allocation3], 0  ;;  %539 = vmatprep.subr.bf16.mxu0 %v538_v7  ;;  %v32_v11 = vld [vmem:[%s780_s2 + $0x18] sm:$0xff]  ;;  %v22_v12 = vld [vmem:[%s779_s1 + $0x8] sm:$0xff]  ;;  %v155_v16 = vlaneseq }
   0x7   :  { %50 = vperm.xlu1 %559, %v32_v11   ;;  %v23_v13 = vld [vmem:[%s779_s1 + $0x10] sm:$0xff]  ;;  %v24_v14 = vld [vmem:[%s779_s1 + $0x18] sm:$0xff]  ;;  %v220_v57 = vld [vmem:[%s782_s4] sm:$0xff] }
   0x8   :  { %40 = vperm.xlu0 %558, %v30_v10   ;;  %v668_v19 = vand.u32 127, %v155_v16  ;;  %v222_v58 = vld [vmem:[%s782_s4 + $0x10] sm:$0xff]  ;;  %v223_v59 = vld [vmem:[%s782_s4 + $0x18] sm:$0xff]  ;;  %v221_v60 = vld [vmem:[%s782_s4 + $0x8] sm:$0xff] }
   0x9   :  { %541 = vmatpush3.bf16.msra.mxu0 %v538_v7  ;;  %v225_v61 = vld [vmem:[%s782_s4 + $0x28] sm:$0xff]  ;;  %v224_v62 = vld [vmem:[%s782_s4 + $0x20] sm:$0xff]  ;;  %v227_v63 = vld [vmem:[%s782_s4 + $0x38] sm:$0xff] }
   0xa   :  { %vm157_vm1 = vcmp.lt.s32.totalorder %v668_v19, 16  ;;  %v226_v0 = vld [vmem:[%s782_s4 + $0x30] sm:$0xff]  ;;  %v212_v1 = vld [vmem:[%s781_s3] sm:$0xff] }
   0xb   :  { %v214_v2 = vld [vmem:[%s781_s3 + $0x10] sm:$0xff] }
   0xc   :  { %509 = vmatmul.mubr.msk.f32.vlgmr.msra.gmra.mrb[0].mxu0 %vm53_vm0, %v22_v12  ;;  %525 = vmatprep.mubr.msk.f32.mxu1 %vm53_vm0, %v214_v2 }
   0xd   :  { %511 = vmatprep.mubr.msk.f32.mxu0 %vm53_vm0, %v23_v13 }
  0x10   :  { %512 = vmatmul.mubr.msk.f32.gmra.mrb[2].mxu0 %vm53_vm0, %v24_v14 }
  0x11   :  { %522 = vmatprep.mubr.msk.f32.mxu0 %vm53_vm0, %v212_v1 }
  0x82   :  { %v46_v17 = vpop.permute.xlu1 %45 }
  0x83   :  { %v36_v15 = vpop.permute.xlu0 %35 }
  0x86   :  { %v51_v25 = vpop.permute.xlu1 %50 }
  0x87   :  { %v41_v18 = vpop.permute.xlu0 %40 }
  0xdf   :  { %v510_v20 = vpop.f32.mrb[0].mxu0 }
  0xe0   :  { %v138_v21 = vadd.f32 %v510_v20, %v41_v18  ;;  %v132_v22 = vpop.f32.mrb[1].mxu0 }
  0xe1   :  { %v133_v23 = vadd.f32 %v132_v22, %v36_v15 }
  0xe2   :  { %v152_v24 = vmax.f32 %v138_v21, 0.0 }
  0xe3   :  { %v151_v26 = vmax.f32 %v133_v23, 0.0  ;;  %v513_v27 = vpop.f32.mrb[2].mxu0 }
  0xe4   :  { %v142_v28 = vpop.f32.mrb[3].mxu0  ;;  %v161_v29 = vsel %vm157_vm1, %v152_v24, 0.0  ;;  %v148_v30 = vadd.f32 %v513_v27, %v51_v25  ;;  %v215_v27 = vld [vmem:[%s781_s3 + $0x18] sm:$0xff] }
  0xe5   :  { %v143_v31 = vadd.f32 %v142_v28, %v46_v17  ;;  %166 = vadd.xlane.f32.xlu1 %v161_v29  ;;  %v160_v32 = vsel %vm157_vm1, %v151_v26, 0.0  ;;  %v216_v28 = vld [vmem:[%s781_s3 + $0x20] sm:$0xff]  ;;  %v217_v29 = vld [vmem:[%s781_s3 + $0x28] sm:$0xff] }
  0xe6   :  { %164 = vadd.xlane.f32.xlu0 %v160_v32  ;;  %v154_v34 = vmax.f32 %v148_v30, 0.0  ;;  %v218_v30 = vld [vmem:[%s781_s3 + $0x30] sm:$0xff] }
  0xe7   :  { %v153_v33 = vmax.f32 %v143_v31, 0.0  ;;  %v219_v31 = vld [vmem:[%s781_s3 + $0x38] sm:$0xff] }
  0xe8   :  { %v163_v36 = vsel %vm157_vm1, %v154_v34, 0.0 }
  0xe9   :  { %v162_v35 = vsel %vm157_vm1, %v153_v33, 0.0 }
  0xea   :  { %168 = vadd.xlane.f32.xlu0 %v162_v35 }
  0xee   :  { %170 = vadd.xlane.f32.xlu0 %v163_v36 }
 0x172   :  { %v167_v37 = vpop.xlane.xlu1 %166 }
 0x173   :  { %v173_v38 = vmul.f32 0.0625, %v167_v37  ;;  %v165_v39 = vpop.xlane.xlu0 %164 }
 0x174   :  { %v172_v40 = vmul.f32 0.0625, %v165_v39 }
 0x175   :  { %v177_v41 = vsub.f32 %v152_v24, %v173_v38 }
 0x176   :  { %v176_v42 = vsub.f32 %v151_v26, %v172_v40  ;;  %v213_v26 = vld [vmem:[%s781_s3 + $0x8] sm:$0xff]  ;;  %s595_s3 = smov [#allocation2]  }
 0x177   :  { %v169_v43 = vpop.xlane.xlu0 %168  ;;  %v181_v44 = vsel %vm157_vm1, %v177_v41, 0.0  ;;  %s457_s17 = sshll.u32 %s595_s3, 4  ;;  %s743_s17 = int_to_ptr.vmem [resolvable:$true] %s457_s17 }
 0x178   :  { %v174_v45 = vmul.f32 0.0625, %v169_v43  ;;  %v185_v46 = vmul.f32 %v181_v44, %v181_v44  ;;  %v180_v47 = vsel %vm157_vm1, %v176_v42, 0.0  ;;  %s570_s18 = scalar_lea.vmem %s743_s17, 1024  ;;  %p575_p1 = scmp.lt.s32.totalorder %s743_s17, %s743_s17 }
 0x179   :  { %v184_v48 = vmul.f32 %v180_v47, %v180_v47  ;;  %p571_p0 = scmp.ne.s32.totalorder %s743_s17, %s570_s18  ;;  %p576_p2 = scmp.lt.s32.totalorder %s570_s18, %s570_s18 }
 0x17a   :  { %v178_v49 = vsub.f32 %v153_v33, %v174_v45  ;;  %190 = vadd.xlane.f32.xlu0 %v185_v46 }
 0x17b   :  { %188 = vadd.xlane.f32.xlu1 %v184_v48  ;;  %v171_v50 = vpop.xlane.xlu0 %170  ;;  %p577_p3 = por %p576_p2, %p575_p1 }
 0x17c   :  { %v175_v51 = vmul.f32 0.0625, %v171_v50  ;;  %v182_v52 = vsel %vm157_vm1, %v178_v49, 0.0 }
 0x17d   :  { %v186_v53 = vmul.f32 %v182_v52, %v182_v52  ;;  %p578_p4 = pnand %p577_p3, %p571_p0 }
 0x17e   :  { %v179_v54 = vsub.f32 %v154_v34, %v175_v51 }
 0x17f   :  { %192 = vadd.xlane.f32.xlu1 %v186_v53 }
 0x180   :  { %v183_v55 = vsel %vm157_vm1, %v179_v54, 0.0 }
 0x181   :  { %v187_v56 = vmul.f32 %v183_v55, %v183_v55 }
 0x183   :  { %194 = vadd.xlane.f32.xlu0 %v187_v56 }
 0x190   :  { %230 = vperm.xlu1 %559, %v220_v57  }
 0x194   :  { %240 = vperm.xlu1 %559, %v222_v58  }
 0x198   :  { %245 = vperm.xlu1 %559, %v223_v59  }
 0x199   :  { %235 = vperm.xlu0 %558, %v221_v60  }
 0x19c   :  { %255 = vperm.xlu1 %559, %v225_v61  }
 0x19d   :  { %250 = vperm.xlu0 %558, %v224_v62  }
 0x1a0   :  { %265 = vperm.xlu1 %559, %v227_v63  }
 0x1a1   :  { %260 = vperm.xlu0 %558, %v226_v0  }
 0x207   :  { %v191_v3 = vpop.xlane.xlu0 %190 }
 0x208   :  { %v197_v4 = vmul.f32 0.0625, %v191_v3  ;;  %v189_v5 = vpop.xlane.xlu1 %188 }
 0x209   :  { %v196_v6 = vmul.f32 0.0625, %v189_v5 }
 0x20a   :  { %v201_v7 = vadd.f32 1e-05, %v197_v4 }
 0x20b   :  { %v200_v8 = vadd.f32 1e-05, %v196_v6 }
 0x20c   :  { %560 = vrsqrt.f32 %v201_v7  ;;  %v193_v9 = vpop.xlane.xlu1 %192 }
 0x20d   :  { %562 = vrsqrt.f32 %v200_v8  ;;  %v198_v10 = vmul.f32 0.0625, %v193_v9 }
 0x20f   :  { %v202_v11 = vadd.f32 1e-05, %v198_v10 }
 0x210   :  { %v195_v12 = vpop.xlane.xlu0 %194  ;;  %v231_v32 = vpop.permute.xlu1 %230 }
 0x211   :  { %v199_v13 = vmul.f32 0.0625, %v195_v12  ;;  %564 = vrsqrt.f32 %v202_v11 }
 0x213   :  { %v203_v14 = vadd.f32 1e-05, %v199_v13 }
 0x214   :  { %v241_v33 = vpop.permute.xlu1 %240 }
 0x215   :  { %566 = vrsqrt.f32 %v203_v14 }
 0x216   :  { %v561_v15 = vpop.eup %560 }
 0x217   :  { %v563_v16 = vpop.eup %562  ;;  %v209_v17 = vmul.f32 %v561_v15, %v177_v41 }
 0x218   :  { %v208_v18 = vmul.f32 %v563_v16, %v176_v42  ;;  %v246_v34 = vpop.permute.xlu1 %245  ;;  %v236_v35 = vpop.permute.xlu0 %235 }
 0x21a   :  { %v542_v20 = vpack.c.bf16 %v209_v17, %v208_v18 }
 0x21b   :  { %v565_v21 = vpop.eup %564 }
 0x21c   :  { %543 = vmatprep.subr.bf16.mxu0 %v542_v20  ;;  %550 = vmatprep.subr.bf16.mxu1 %v542_v20  ;;  %v210_v23 = vmul.f32 %v565_v21, %v178_v49  ;;  %v256_v42 = vpop.permute.xlu1 %255  ;;  %v251_v45 = vpop.permute.xlu0 %250 }
 0x21d   :  { %545 = vmatpush3.bf16.msra.mxu0 %v542_v20  ;;  %552 = vmatpush3.bf16.msra.mxu1 %v542_v20 }
 0x21f   :  { %v567_v22 = vpop.eup %566 }
 0x220   :  { %v211_v24 = vmul.f32 %v567_v22, %v179_v54  ;;  %v266_v56 = vpop.permute.xlu1 %265  ;;  %v261_v61 = vpop.permute.xlu0 %260 }
 0x222   :  { %v546_v25 = vpack.c.bf16 %v211_v24, %v210_v23 }
 0x224   :  { %547 = vmatprep.subr.bf16.mxu0 %v546_v25  ;;  %551 = vmatprep.subr.bf16.mxu1 %v546_v25 }
 0x225   :  { %549 = vmatpush3.bf16.msra.mxu0 %v546_v25  ;;  %553 = vmatpush3.bf16.msra.mxu1 %v546_v25 }
 0x228   :  { %523 = vmatmul.mubr.msk.f32.vlgmr.msra.gmra.mrb[4].mxu0 %vm53_vm0, %v213_v26  ;;  %526 = vmatmul.mubr.msk.f32.vlgmr.msra.gmra.mrb[0].mxu1 %vm53_vm0, %v215_v27 }
 0x229   :  { %528 = vmatprep.mubr.msk.f32.mxu1 %vm53_vm0, %v216_v28 }
 0x22c   :  { %529 = vmatmul.mubr.msk.f32.gmra.mrb[2].mxu1 %vm53_vm0, %v217_v29 }
 0x22d   :  { %531 = vmatprep.mubr.msk.f32.mxu1 %vm53_vm0, %v218_v30 }
 0x230   :  { %532 = vmatmul.mubr.msk.f32.gmra.mrb[4].mxu1 %vm53_vm0, %v219_v31 }
 0x2fb   :  { %v524_v36 = vpop.f32.mrb[4].mxu0  ;;  %v527_v37 = vpop.f32.mrb[0].mxu1 }
 0x2fc   :  { %v364_v38 = vadd.f32 %v524_v36, %v236_v35  ;;  %v374_v39 = vadd.f32 %v527_v37, %v246_v34  ;;  %v358_v40 = vpop.f32.mrb[5].mxu0  ;;  %v368_v41 = vpop.f32.mrb[1].mxu1 }
 0x2fd   :  { %v359_v43 = vadd.f32 %v358_v40, %v231_v32  ;;  %v369_v44 = vadd.f32 %v368_v41, %v241_v33 }
 0x2fe   :  { %v398_v46 = vmax.f32 %v364_v38, 0.0  ;;  %v400_v51 = vmax.f32 %v374_v39, 0.0 }
 0x2ff   :  { %v397_v47 = vmax.f32 %v359_v43, 0.0  ;;  %v399_v48 = vmax.f32 %v369_v44, 0.0  ;;  %v530_v49 = vpop.f32.mrb[2].mxu1 }
 0x300   :  { %v406_v50 = vmul.f32 %v398_v46, %v398_v46  ;;  %v378_v52 = vpop.f32.mrb[3].mxu1  ;;  %v384_v54 = vadd.f32 %v530_v49, %v256_v42  ;;  %v408_v62 = vmul.f32 %v400_v51, %v400_v51 }
 0x301   :  { %v405_v53 = vmul.f32 %v397_v47, %v397_v47  ;;  %v379_v55 = vadd.f32 %v378_v52, %v251_v45  ;;  %v407_v58 = vmul.f32 %v399_v48, %v399_v48 }
 0x302   :  { %v402_v1 = vmax.f32 %v384_v54, 0.0 }
 0x303   :  { %v413_v57 = vadd.f32 %v406_v50, %v405_v53  ;;  %v401_v59 = vmax.f32 %v379_v55, 0.0  ;;  %v533_v60 = vpop.f32.mrb[4].mxu1 }
 0x304   :  { %v388_v63 = vpop.f32.mrb[5].mxu1  ;;  %v394_v2 = vadd.f32 %v533_v60, %v266_v56  ;;  %v410_v7 = vmul.f32 %v402_v1, %v402_v1 }
 0x305   :  { %v414_v0 = vadd.f32 %v413_v57, %v407_v58  ;;  %v389_v3 = vadd.f32 %v388_v63, %v261_v61  ;;  %v409_v4 = vmul.f32 %v401_v59, %v401_v59 }
 0x306   :  { %v404_v9 = vmax.f32 %v394_v2, 0.0 }
 0x307   :  { %v415_v5 = vadd.f32 %v414_v0, %v408_v62  ;;  %v403_v6 = vmax.f32 %v389_v3, 0.0 }
 0x308   :  { %v412_v12 = vmul.f32 %v404_v9, %v404_v9 }
 0x309   :  { %v416_v8 = vadd.f32 %v415_v5, %v409_v4  ;;  %v411_v10 = vmul.f32 %v403_v6, %v403_v6 }
 0x30b   :  { %v417_v11 = vadd.f32 %v416_v8, %v410_v7 }
 0x30d   :  { %v418_v13 = vadd.f32 %v417_v11, %v411_v10 }
 0x30f   :  { %v419_v14 = vadd.f32 %v418_v13, %v412_v12 }
 0x311   :  { %v420_v15 = vrot.slane %v419_v14, 4 }
 0x313   :  { %v421_v16 = vadd.f32 %v420_v15, %v419_v14 }
 0x315   :  { %v422_v17 = vrot.slane %v421_v16, 2 }
 0x317   :  { %v423_v18 = vadd.f32 %v422_v17, %v421_v16 }
 0x319   :  { %v424_v20 = vrot.slane %v423_v18, 1 }
 0x31b   :  { %v425_v21 = vadd.f32 %v424_v20, %v423_v18 }
 0x31d   :  { %v426_v22 = vmax.f32 %v425_v21, 1e-24 }
 0x31f   :  { %568 = vrsqrt.f32 %v426_v22 }
 0x329   :  { %v569_v23 = vpop.eup %568 }
 0x32a   :  { %v434_v24 = vmul.f32 %v569_v23, %v403_v6  ;;  %v428_v25 = vmul.f32 %v569_v23, %v397_v47  ;;  %v429_v26 = vmul.f32 %v569_v23, %v398_v46  ;;  %v430_v27 = vmul.f32 %v569_v23, %v399_v48 }
 0x32b   :  { %v431_v28 = vmul.f32 %v569_v23, %v400_v51  ;;  %v432_v29 = vmul.f32 %v569_v23, %v401_v59  ;;  %v433_v30 = vmul.f32 %v569_v23, %v402_v1  ;;  %v435_v31 = vmul.f32 %v569_v23, %v404_v9 }
 0x32c   :  { %v442_v32 = vsel %vm157_vm1, %v434_v24, 0.0  ;;  %v436_v33 = vsel %vm157_vm1, %v428_v25, 0.0  ;;  %v437_v34 = vsel %vm157_vm1, %v429_v26, 0.0  ;;  %v438_v35 = vsel %vm157_vm1, %v430_v27, 0.0 }
 0x32d   :  { %450 = vst [vmem:[#allocation2 + $0x30] sm:$0xff] %v442_v32  ;;  %v439_v36 = vsel %vm157_vm1, %v431_v28, 0.0  ;;  %v440_v37 = vsel %vm157_vm1, %v432_v29, 0.0  ;;  %v441_v38 = vsel %vm157_vm1, %v433_v30, 0.0  ;;  %v443_v39 = vsel %vm157_vm1, %v435_v31, 0.0  ;;  %444 = vst [vmem:[#allocation2] sm:$0xff] %v436_v33 }
 0x32e   :  { %445 = vst [vmem:[#allocation2 + $0x8] sm:$0xff] %v437_v34  ;;  %446 = vst [vmem:[#allocation2 + $0x10] sm:$0xff] %v438_v35 }
 0x32f   :  { %447 = vst [vmem:[#allocation2 + $0x18] sm:$0xff] %v439_v36  ;;  %448 = vst [vmem:[#allocation2 + $0x20] sm:$0xff] %v440_v37 }
 0x330   :  { %449 = vst [vmem:[#allocation2 + $0x28] sm:$0xff] %v441_v38  ;;  %451 = vst [vmem:[#allocation2 + $0x38] sm:$0xff] %v443_v39 }
 0x331   :  { %581 = shalt.err (!%p578_p4)
}
 0x332   :  { %s582_s21 = scalar_lea.hbm %s783_s5, 1024 }
 0x333   :  { %p583_p5 = scmp.ne.s32.totalorder %s783_s5, %s582_s21  ;;  %p586_p6 = scmp.lt.u32.totalorder %s582_s21, %s783_s5 }
 0x335   :  { %p588_p7 = pnand %p586_p6, %p583_p5 }
 0x337   :  { %591 = shalt.err (!%p588_p7)
}
 0x338   :  { %s596_s26 = smov 128   ;;  %s597_s27 = smov 8  }
 0x339   :  { %463 = dma.vmem_to_hbm [thread:$0]  %s743_s17, 1024, %s783_s5, [#allocation3], %s596_s26, %s596_s26, %s597_s27  }
 0x33a   :  { %592 = dma.done.wait [#allocation3], 1024  }
 0x33b   :  { %593 = vsyncadd [#allocation3], 4294966272 }
 0x33c   :  { %467 = vsyncpa [#allocation3], 1 }

</bundles_post_ra>
